<compile_context>
chip_gen: v7x
topology: tpu7x:2x2x1
jax: 0.10.0
libtpu: 0.0.40
codegen_flags: <defaults>
</compile_context>

<pallas_src>
import jax
import jax.numpy as jnp
from jax.experimental import pallas as pl
from jax.experimental.pallas import tpu as pltpu


def mlp_kernel(x_ref,
               w1_ref, b1_ref,
               w2_ref, b2_ref,
               w3_ref, b3_ref,
               w4_ref, b4_ref,
               o_ref):
    # x_ref: (tm, F) f32; wN_ref: (inN, outN) bf16; bN_ref: (1, outN) f32
    # Cast the activation tile to bf16 in VMEM (VPU has slack; avoids an
    # extra HBM pass in the wrapper).
    h = x_ref[...].astype(jnp.bfloat16)

    h = jnp.dot(h, w1_ref[...],
                preferred_element_type=jnp.float32) + b1_ref[...]
    h = jnp.maximum(h, 0.0)

    h = jnp.dot(h.astype(jnp.bfloat16), w2_ref[...],
                preferred_element_type=jnp.float32) + b2_ref[...]
    h = jnp.maximum(h, 0.0)

    h = jnp.dot(h.astype(jnp.bfloat16), w3_ref[...],
                preferred_element_type=jnp.float32) + b3_ref[...]
    h = jnp.maximum(h, 0.0)

    h = jnp.dot(h.astype(jnp.bfloat16), w4_ref[...],
                preferred_element_type=jnp.float32) + b4_ref[...]
    o_ref[...] = h.astype(o_ref.dtype)


def _pick_batch_tile(batch, max_tile=1024):
    """Pick a large, sublane-friendly batch tile.

    - If the batch fits in one sublane group (<= 8 rows) use the full batch
      as a single block (legal: block dim == full array dim).
    - Otherwise use a multiple of 8, capped at `max_tile`, and no larger than
      ceil(batch/2) so the grid always has >= 2 steps once batch >= 16 and
      the "parallel" axis can shard across both v7x TensorCores.
    The grid uses pl.cdiv, so the last block may be ragged (Pallas masks it).
    """
    if batch <= 8:
        return batch
    half = -(-batch // 2)          # ceil(batch / 2)
    tm = -(-half // 8) * 8         # round up to a multiple of 8 (sublane)
    return min(max_tile, tm)


def mlp_forward(x, params):
    """x: (B, ...) any trailing shape (f32); params: tuple of (w, b) per layer
    with w already in (in, out) layout and bf16, b in f32 shape (1, out)."""
    B = x.shape[0]
    F = 1
    for s in x.shape[1:]:
        F *= s
    # Same as torch `.view(-1, F)`.  NOTE: no dtype cast here — the bf16
    # cast is fused into the kernel so x is read from HBM exactly once, f32.
    x_flat = x.reshape(B, F)

    (w1, b1), (w2, b2), (w3, b3), (w4, b4) = params
    O = w4.shape[1]

    tm = _pick_batch_tile(B)
    grid = (pl.cdiv(B, tm),)

    def x_map(i):
        return (i, 0)

    def const_map(i):
        return (0, 0)

    w_spec = lambda w: pl.BlockSpec(w.shape, const_map)
    b_spec = lambda b: pl.BlockSpec(b.shape, const_map)

    out = pl.pallas_call(
        mlp_kernel,
        out_shape=jax.ShapeDtypeStruct((B, O), jnp.float32),
        grid_spec=pltpu.PrefetchScalarGridSpec(
            num_scalar_prefetch=0,
            grid=grid,
            in_specs=[
                pl.BlockSpec((tm, F), x_map),
                w_spec(w1), b_spec(b1),
                w_spec(w2), b_spec(b2),
                w_spec(w3), b_spec(b3),
                w_spec(w4), b_spec(b4),
            ],
            out_specs=pl.BlockSpec((tm, O), x_map),
        ),
        compiler_params=pltpu.CompilerParams(
            dimension_semantics=("parallel",),
            vmem_limit_bytes=32 * 1024 * 1024),
    )(x_flat, w1, b1, w2, b2, w3, b3, w4, b4)
    return out


def init_mlp_params(key, input_dim, hidden_dim, output_dim):
    """PyTorch-style nn.Linear init, but weights stored pre-transposed (in, out)
    and pre-cast to bf16 once (hoisted out of the forward path)."""
    dims = [(input_dim, hidden_dim), (hidden_dim, 128), (128, 64),
            (64, output_dim)]
    params_kernel = []
    params_f32 = []
    for (fan_in, fan_out) in dims:
        key, kw, kb = jax.random.split(key, 3)
        bound = 1.0 / (fan_in ** 0.5)
        # (out, in) like PyTorch, then transpose once at init time.
        w_pt = jax.random.uniform(kw, (fan_out, fan_in),
                                  minval=-bound, maxval=bound,
                                  dtype=jnp.float32)
        b = jax.random.uniform(kb, (fan_out,),
                               minval=-bound, maxval=bound,
                               dtype=jnp.float32)
        w_t = w_pt.T                                   # (in, out), done once
        params_f32.append((w_t, b))
        params_kernel.append((w_t.astype(jnp.bfloat16), b.reshape(1, fan_out)))
    return tuple(params_kernel), tuple(params_f32)


# --- plain-JAX references ---------------------------------------------------
def ref_bf16(x, params):
    """Same bf16-input / f32-accumulate path as the kernel (tight check)."""
    h = x.reshape(x.shape[0], -1).astype(jnp.bfloat16)
    for li, (w, b) in enumerate(params):
        h = jnp.dot(h, w.astype(jnp.bfloat16),
                    preferred_element_type=jnp.float32) + b
        if li < len(params) - 1:
            h = jnp.maximum(h, 0.0).astype(jnp.bfloat16)
    return h


def ref_f32(x, params):
    """Full f32 path (matches the PyTorch module semantics; loose tolerance
    because the kernel runs the bf16 MXU path)."""
    h = x.reshape(x.shape[0], -1)
    for li, (w, b) in enumerate(params):
        h = h @ w + b
        if li < len(params) - 1:
            h = jnp.maximum(h, 0.0)
    return h


if __name__ == "__main__":
    key = jax.random.PRNGKey(0)
    k_x, k_x2, k_p = jax.random.split(key, 3)

    # Small shapes consistent with the module: x is (B, C, H, W);
    # forward flattens everything but batch -> input_dim = C*H*W.
    B, C, H, W = 2, 4, 16, 16
    input_dim = C * H * W          # 1024
    hidden_dim = 32
    output_dim = 32

    params_kernel, params_f32 = init_mlp_params(
        k_p, input_dim, hidden_dim, output_dim)

    fwd = jax.jit(mlp_forward)

    # Case 1: the small (B=2) demo shape -> single full-extent block.
    x = jax.random.normal(k_x, (B, C, H, W), dtype=jnp.float32)
    out = fwd(x, params_kernel)
    jax.block_until_ready(out)
    assert out.shape == (B, output_dim)
    assert jnp.allclose(out, ref_bf16(x, params_f32), atol=2e-3, rtol=2e-3)
    assert jnp.allclose(out, ref_f32(x, params_f32), atol=5e-2, rtol=5e-2)

    # Case 2: a batch that exercises the cdiv grid with a ragged last block
    # and >= 2 grid steps (B=20 -> tm=16, grid=(2,), last block 4 valid rows).
    B2 = 20
    x2 = jax.random.normal(k_x2, (B2, C, H, W), dtype=jnp.float32)
    out2 = fwd(x2, params_kernel)
    jax.block_until_ready(out2)
    assert out2.shape == (B2, output_dim)
    assert jnp.allclose(out2, ref_bf16(x2, params_f32), atol=2e-3, rtol=2e-3)
    assert jnp.allclose(out2, ref_f32(x2, params_f32), atol=5e-2, rtol=5e-2)

    print("KERNEL_OK")
</pallas_src>

<mosaic_0001>
module attributes {stable_mosaic.version = 11 : i64} {
  func.func @mlp_kernel(%arg0: i32, %arg1: memref<2x1024xf32, #tpu.memory_space<vmem>>, %arg2: memref<1024x32xbf16, #tpu.memory_space<vmem>>, %arg3: memref<1x32xf32, #tpu.memory_space<vmem>>, %arg4: memref<32x128xbf16, #tpu.memory_space<vmem>>, %arg5: memref<1x128xf32, #tpu.memory_space<vmem>>, %arg6: memref<128x64xbf16, #tpu.memory_space<vmem>>, %arg7: memref<1x64xf32, #tpu.memory_space<vmem>>, %arg8: memref<64x32xbf16, #tpu.memory_space<vmem>>, %arg9: memref<1x32xf32, #tpu.memory_space<vmem>>, %arg10: memref<2x32xf32, #tpu.memory_space<vmem>>) attributes {dimension_semantics = [#tpu.dimension_semantics<parallel>], iteration_bounds = array<i64: 1>, scalar_prefetch = 0 : i64, scratch_operands = 0 : i64, tpu.core_type = #tpu.core_type<tc>, window_params = [{transform_indices = @transform_0, window_bounds = array<i64: 2, 1024>}, {pipeline_mode = #tpu.pipeline_mode<synchronous>, transform_indices = @transform_1, window_bounds = array<i64: 1024, 32>}, {pipeline_mode = #tpu.pipeline_mode<synchronous>, transform_indices = @transform_2, window_bounds = array<i64: 1, 32>}, {pipeline_mode = #tpu.pipeline_mode<synchronous>, transform_indices = @transform_3, window_bounds = array<i64: 32, 128>}, {pipeline_mode = #tpu.pipeline_mode<synchronous>, transform_indices = @transform_4, window_bounds = array<i64: 1, 128>}, {pipeline_mode = #tpu.pipeline_mode<synchronous>, transform_indices = @transform_5, window_bounds = array<i64: 128, 64>}, {pipeline_mode = #tpu.pipeline_mode<synchronous>, transform_indices = @transform_6, window_bounds = array<i64: 1, 64>}, {pipeline_mode = #tpu.pipeline_mode<synchronous>, transform_indices = @transform_7, window_bounds = array<i64: 64, 32>}, {pipeline_mode = #tpu.pipeline_mode<synchronous>, transform_indices = @transform_8, window_bounds = array<i64: 1, 32>}, {transform_indices = @transform_9, window_bounds = array<i64: 2, 32>}]} {
    %c0 = arith.constant 0 : index
    %c0_0 = arith.constant 0 : index
    %0 = vector.load %arg1[%c0, %c0_0] : memref<2x1024xf32, #tpu.memory_space<vmem>>, vector<2x1024xf32>
    %1 = arith.truncf %0 : vector<2x1024xf32> to vector<2x1024xbf16>
    %c0_1 = arith.constant 0 : index
    %c0_2 = arith.constant 0 : index
    %2 = vector.load %arg2[%c0_1, %c0_2] : memref<1024x32xbf16, #tpu.memory_space<vmem>>, vector<1024x32xbf16>
    %cst = arith.constant dense<0.000000e+00> : vector<2x32xf32>
    %3 = tpu.matmul %1, %2, %cst {dimension_numbers = #tpu.dot_dimension_numbers<[1], [0], [0], [1], [0, 0, 1, 1], [], []>} : vector<2x1024xbf16>, vector<1024x32xbf16>, vector<2x32xf32> -> vector<2x32xf32>
    %c0_3 = arith.constant 0 : index
    %c0_4 = arith.constant 0 : index
    %4 = vector.load %arg3[%c0_3, %c0_4] : memref<1x32xf32, #tpu.memory_space<vmem>>, vector<1x32xf32>
    %5 = vector.broadcast %4 : vector<1x32xf32> to vector<2x32xf32>
    %6 = arith.addf %3, %5 : vector<2x32xf32>
    %cst_5 = arith.constant 0.000000e+00 : f32
    %7 = vector.broadcast %cst_5 : f32 to vector<2x32xf32>
    %8 = arith.maximumf %6, %7 : vector<2x32xf32>
    %9 = arith.truncf %8 : vector<2x32xf32> to vector<2x32xbf16>
    %c0_6 = arith.constant 0 : index
    %c0_7 = arith.constant 0 : index
    %10 = vector.load %arg4[%c0_6, %c0_7] : memref<32x128xbf16, #tpu.memory_space<vmem>>, vector<32x128xbf16>
    %cst_8 = arith.constant dense<0.000000e+00> : vector<2x128xf32>
    %11 = tpu.matmul %9, %10, %cst_8 {dimension_numbers = #tpu.dot_dimension_numbers<[1], [0], [0], [1], [0, 0, 1, 1], [], []>} : vector<2x32xbf16>, vector<32x128xbf16>, vector<2x128xf32> -> vector<2x128xf32>
    %c0_9 = arith.constant 0 : index
    %c0_10 = arith.constant 0 : index
    %12 = vector.load %arg5[%c0_9, %c0_10] : memref<1x128xf32, #tpu.memory_space<vmem>>, vector<1x128xf32>
    %13 = vector.broadcast %12 : vector<1x128xf32> to vector<2x128xf32>
    %14 = arith.addf %11, %13 : vector<2x128xf32>
    %cst_11 = arith.constant 0.000000e+00 : f32
    %15 = vector.broadcast %cst_11 : f32 to vector<2x128xf32>
    %16 = arith.maximumf %14, %15 : vector<2x128xf32>
    %17 = arith.truncf %16 : vector<2x128xf32> to vector<2x128xbf16>
    %c0_12 = arith.constant 0 : index
    %c0_13 = arith.constant 0 : index
    %18 = vector.load %arg6[%c0_12, %c0_13] : memref<128x64xbf16, #tpu.memory_space<vmem>>, vector<128x64xbf16>
    %cst_14 = arith.constant dense<0.000000e+00> : vector<2x64xf32>
    %19 = tpu.matmul %17, %18, %cst_14 {dimension_numbers = #tpu.dot_dimension_numbers<[1], [0], [0], [1], [0, 0, 1, 1], [], []>} : vector<2x128xbf16>, vector<128x64xbf16>, vector<2x64xf32> -> vector<2x64xf32>
    %c0_15 = arith.constant 0 : index
    %c0_16 = arith.constant 0 : index
    %20 = vector.load %arg7[%c0_15, %c0_16] : memref<1x64xf32, #tpu.memory_space<vmem>>, vector<1x64xf32>
    %21 = vector.broadcast %20 : vector<1x64xf32> to vector<2x64xf32>
    %22 = arith.addf %19, %21 : vector<2x64xf32>
    %cst_17 = arith.constant 0.000000e+00 : f32
    %23 = vector.broadcast %cst_17 : f32 to vector<2x64xf32>
    %24 = arith.maximumf %22, %23 : vector<2x64xf32>
    %25 = arith.truncf %24 : vector<2x64xf32> to vector<2x64xbf16>
    %c0_18 = arith.constant 0 : index
    %c0_19 = arith.constant 0 : index
    %26 = vector.load %arg8[%c0_18, %c0_19] : memref<64x32xbf16, #tpu.memory_space<vmem>>, vector<64x32xbf16>
    %cst_20 = arith.constant dense<0.000000e+00> : vector<2x32xf32>
    %27 = tpu.matmul %25, %26, %cst_20 {dimension_numbers = #tpu.dot_dimension_numbers<[1], [0], [0], [1], [0, 0, 1, 1], [], []>} : vector<2x64xbf16>, vector<64x32xbf16>, vector<2x32xf32> -> vector<2x32xf32>
    %c0_21 = arith.constant 0 : index
    %c0_22 = arith.constant 0 : index
    %28 = vector.load %arg9[%c0_21, %c0_22] : memref<1x32xf32, #tpu.memory_space<vmem>>, vector<1x32xf32>
    %29 = vector.broadcast %28 : vector<1x32xf32> to vector<2x32xf32>
    %30 = arith.addf %27, %29 : vector<2x32xf32>
    %c0_23 = arith.constant 0 : index
    %c0_24 = arith.constant 0 : index
    %31 = vector.load %arg10[%c0_23, %c0_24] : memref<2x32xf32, #tpu.memory_space<vmem>>, vector<2x32xf32>
    tpu.vector_store %arg10[%c0_23, %c0_24], %30 {strides = array<i32>} : memref<2x32xf32, #tpu.memory_space<vmem>>, vector<2x32xf32>,
    return
  }
  func.func @transform_0(%arg0: i32) -> (i32, i32) {
    %c0_i32 = arith.constant 0 : i32
    %c0_i32_0 = arith.constant 0 : i32
    return %arg0, %c0_i32 : i32, i32
  }
  func.func @transform_1(%arg0: i32) -> (i32, i32) {
    %c0_i32 = arith.constant 0 : i32
    %c0_i32_0 = arith.constant 0 : i32
    %c0_i32_1 = arith.constant 0 : i32
    return %c0_i32, %c0_i32_0 : i32, i32
  }
  func.func @transform_2(%arg0: i32) -> (i32, i32) {
    %c0_i32 = arith.constant 0 : i32
    %c0_i32_0 = arith.constant 0 : i32
    %c0_i32_1 = arith.constant 0 : i32
    return %c0_i32, %c0_i32_0 : i32, i32
  }
  func.func @transform_3(%arg0: i32) -> (i32, i32) {
    %c0_i32 = arith.constant 0 : i32
    %c0_i32_0 = arith.constant 0 : i32
    %c0_i32_1 = arith.constant 0 : i32
    return %c0_i32, %c0_i32_0 : i32, i32
  }
  func.func @transform_4(%arg0: i32) -> (i32, i32) {
    %c0_i32 = arith.constant 0 : i32
    %c0_i32_0 = arith.constant 0 : i32
    %c0_i32_1 = arith.constant 0 : i32
    return %c0_i32, %c0_i32_0 : i32, i32
  }
  func.func @transform_5(%arg0: i32) -> (i32, i32) {
    %c0_i32 = arith.constant 0 : i32
    %c0_i32_0 = arith.constant 0 : i32
    %c0_i32_1 = arith.constant 0 : i32
    return %c0_i32, %c0_i32_0 : i32, i32
  }
  func.func @transform_6(%arg0: i32) -> (i32, i32) {
    %c0_i32 = arith.constant 0 : i32
    %c0_i32_0 = arith.constant 0 : i32
    %c0_i32_1 = arith.constant 0 : i32
    return %c0_i32, %c0_i32_0 : i32, i32
  }
  func.func @transform_7(%arg0: i32) -> (i32, i32) {
    %c0_i32 = arith.constant 0 : i32
    %c0_i32_0 = arith.constant 0 : i32
    %c0_i32_1 = arith.constant 0 : i32
    return %c0_i32, %c0_i32_0 : i32, i32
  }
  func.func @transform_8(%arg0: i32) -> (i32, i32) {
    %c0_i32 = arith.constant 0 : i32
    %c0_i32_0 = arith.constant 0 : i32
    %c0_i32_1 = arith.constant 0 : i32
    return %c0_i32, %c0_i32_0 : i32, i32
  }
  func.func @transform_9(%arg0: i32) -> (i32, i32) {
    %c0_i32 = arith.constant 0 : i32
    %c0_i32_0 = arith.constant 0 : i32
    return %arg0, %c0_i32 : i32, i32
  }
}

</mosaic_0001>

<bundles_post_ra>
// kernel: mlp_forward.1
= control target key start
LH: loop header
LB: loop body
LE: loop exit
PB: predicated region body
PF: predicated region fallthrough
CT: control target
= control target key end

     0   :  { %v42_v28 = vlaneseq  ;;  %v1387_v36 = vmov 1983009808   ;;  %s1731_s0 = inlined_call_operand.vmem [shape: f32[2,1024], index: 0, kind: input, shape index: {}]   ;;  %s1732_s1 = inlined_call_operand.vmem [shape: bf16[1024,32], index: 1, kind: input, shape index: {}]   ;;  %s1733_s2 = inlined_call_operand.vmem [shape: f32[1,32], index: 2, kind: input, shape index: {}]   ;;  %s1734_s3 = inlined_call_operand.vmem [shape: bf16[32,128], index: 3, kind: input, shape index: {}]   ;;  %s1735_s4 = inlined_call_operand.vmem [shape: f32[1,128], index: 4, kind: input, shape index: {}]   ;;  %s1736_s5 = inlined_call_operand.vmem [shape: bf16[128,64], index: 5, kind: input, shape index: {}]   ;;  %s1737_s6 = inlined_call_operand.vmem [shape: f32[1,64], index: 6, kind: input, shape index: {}]   ;;  %s1738_s7 = inlined_call_operand.vmem [shape: bf16[64,32], index: 7, kind: input, shape index: {}]   ;;  %s1739_s8 = inlined_call_operand.vmem [shape: f32[1,32], index: 8, kind: input, shape index: {}]   ;;  %s1740_s9 = inlined_call_operand.hbm [shape: f32[2,32], index: 9, kind: output, shape index: {}]  }
   0x1   :  { %v1283_v0 = vld [vmem:[%s1732_s1 + $0x40] sm:$0xff]   ;;  %v1287_v4 = vld [vmem:[%s1732_s1 + $0x48] sm:$0xff]   ;;  %v1291_v8 = vld [vmem:[%s1732_s1 + $0x50] sm:$0xff]   ;;  %v40_v37 = vunpack.c.l.s4 %v1387_v36 }
   0x2   :  { %v1284_v1 = vld [vmem:[%s1732_s1 + $0xc0] sm:$0xff]   ;;  %1134 = vmatprep.subr.bf16.mxu0 %v1283_v0  ;;  %v1288_v5 = vld [vmem:[%s1732_s1 + $0xc8] sm:$0xff]   ;;  %v1292_v9 = vld [vmem:[%s1732_s1 + $0xd0] sm:$0xff]   ;;  %v43_v33 = vshrl.u32 %v42_v28, 7 }
   0x3   :  { %v1285_v2 = vld [vmem:[%s1732_s1] sm:$0xff]   ;;  %1156 = vmatprep.subr.bf16.mxu1 %v1284_v1  ;;  %v1289_v6 = vld [vmem:[%s1732_s1 + $0x8] sm:$0xff]   ;;  %v1293_v10 = vld [vmem:[%s1732_s1 + $0x10] sm:$0xff]   ;;  %v41_v39 = vunpack.c.0.s8 %v40_v37 }
   0x4   :  { %v1286_v3 = vld [vmem:[%s1732_s1 + $0x80] sm:$0xff]   ;;  %1135 = vmatpush3.bf16.msra.mxu0 %v1285_v2  ;;  %v1290_v7 = vld [vmem:[%s1732_s1 + $0x88] sm:$0xff]   ;;  %v1294_v11 = vld [vmem:[%s1732_s1 + $0x90] sm:$0xff]  }
   0x5   :  { %1157 = vmatpush3.bf16.msra.mxu1 %v1286_v3  ;;  %1136 = vmatprep.subr.bf16.mxu0 %v1287_v4  ;;  %v1295_v12 = vld [vmem:[%s1732_s1 + $0x58] sm:$0xff]   ;;  %v1299_v16 = vld [vmem:[%s1732_s1 + $0x60] sm:$0xff]   ;;  %v1303_v20 = vld [vmem:[%s1732_s1 + $0x68] sm:$0xff]   ;;  %v1546_v41 = vsub.s32 %v41_v39, %v43_v33 }
   0x6   :  { %1158 = vmatprep.subr.bf16.mxu1 %v1288_v5  ;;  %v1296_v13 = vld [vmem:[%s1732_s1 + $0xd8] sm:$0xff]   ;;  %v1300_v17 = vld [vmem:[%s1732_s1 + $0xe0] sm:$0xff]   ;;  %v1304_v21 = vld [vmem:[%s1732_s1 + $0xe8] sm:$0xff]  }
   0x7   :  { %v1297_v14 = vld [vmem:[%s1732_s1 + $0x18] sm:$0xff]   ;;  %v1301_v18 = vld [vmem:[%s1732_s1 + $0x20] sm:$0xff]   ;;  %v1305_v22 = vld [vmem:[%s1732_s1 + $0x28] sm:$0xff]  }
   0x8   :  { %1137 = vmatpush3.bf16.msra.mxu0 %v1289_v6  ;;  %v1298_v15 = vld [vmem:[%s1732_s1 + $0x98] sm:$0xff]   ;;  %v1302_v19 = vld [vmem:[%s1732_s1 + $0xa0] sm:$0xff]   ;;  %v1306_v23 = vld [vmem:[%s1732_s1 + $0xa8] sm:$0xff]  }
   0x9   :  { %1159 = vmatpush3.bf16.msra.mxu1 %v1290_v7  ;;  %1138 = vmatprep.subr.bf16.mxu0 %v1291_v8  ;;  %v1307_v24 = vld [vmem:[%s1732_s1 + $0x70] sm:$0xff]   ;;  %v1311_v29 = vld [vmem:[%s1732_s1 + $0x78] sm:$0xff]   ;;  %v34_v34 = vld [vmem:[%s1731_s0] sm:$0xff] }
   0xa   :  { %1160 = vmatprep.subr.bf16.mxu1 %v1292_v9  ;;  %v1308_v25 = vld [vmem:[%s1732_s1 + $0xf0] sm:$0xff]   ;;  %v1312_v30 = vld [vmem:[%s1732_s1 + $0xf8] sm:$0xff]   ;;  %v1316_v35 = vld [vmem:[%s1732_s1 + $0x140] sm:$0xff]   ;;  %v38_v40 = vcombine.high %v34_v34, %v34_v34  ;;  %v45_v42 = vrot.slane %v34_v34, %v1546_v41 }
   0xb   :  { %v1309_v26 = vld [vmem:[%s1732_s1 + $0x30] sm:$0xff]   ;;  %v1313_v31 = vld [vmem:[%s1732_s1 + $0x38] sm:$0xff]   ;;  %v1317_v38 = vld [vmem:[%s1732_s1 + $0x1c0] sm:$0xff]  }
   0xc   :  { %1139 = vmatpush3.bf16.msra.mxu0 %v1293_v10  ;;  %v1310_v27 = vld [vmem:[%s1732_s1 + $0xb0] sm:$0xff]   ;;  %v1314_v32 = vld [vmem:[%s1732_s1 + $0xb8] sm:$0xff]   ;;  %v52_v43 = vrot.slane %v38_v40, %v1546_v41  ;;  %v53_v44 = vcombine.high %v45_v42, %v45_v42  ;;  %v1318_v46 = vld [vmem:[%s1732_s1 + $0x100] sm:$0xff]   ;;  %v80_v47 = vpack.c.bf16 %v45_v42, %v45_v42 }
   0xd   :  { %1161 = vmatpush3.bf16.msra.mxu1 %v1294_v11  ;;  %1140 = vmatprep.subr.bf16.mxu0 %v1295_v12  ;;  %v1319_v49 = vld [vmem:[%s1732_s1 + $0x180] sm:$0xff]   ;;  %v1320_v52 = vld [vmem:[%s1732_s1 + $0x148] sm:$0xff]   ;;  %v1324_v56 = vld [vmem:[%s1732_s1 + $0x150] sm:$0xff]  }
   0xe   :  { %1162 = vmatprep.subr.bf16.mxu1 %v1296_v13  ;;  %v54_v45 = vcombine.high %v52_v43, %v52_v43  ;;  %v82_v48 = vpack.c.bf16 %v52_v43, %v52_v43  ;;  %v81_v50 = vpack.c.bf16 %v53_v44, %v53_v44  ;;  %v1321_v53 = vld [vmem:[%s1732_s1 + $0x1c8] sm:$0xff]   ;;  %v1325_v57 = vld [vmem:[%s1732_s1 + $0x1d0] sm:$0xff]   ;;  %v1328_v60 = vld [vmem:[%s1732_s1 + $0x158] sm:$0xff]  }
   0xf   :  { %v1322_v54 = vld [vmem:[%s1732_s1 + $0x108] sm:$0xff]   ;;  %v1326_v58 = vld [vmem:[%s1732_s1 + $0x110] sm:$0xff]   ;;  %v1329_v61 = vld [vmem:[%s1732_s1 + $0x1d8] sm:$0xff]  }
  0x10   :  { %1141 = vmatpush3.bf16.msra.mxu0 %v1297_v14  ;;  %v83_v51 = vpack.c.bf16 %v54_v45, %v54_v45  ;;  %639 = vmatprep.mubr.bf16.mxu0 %v81_v50  ;;  %v1323_v55 = vld [vmem:[%s1732_s1 + $0x188] sm:$0xff]   ;;  %v1327_v59 = vld [vmem:[%s1732_s1 + $0x190] sm:$0xff]   ;;  %v1330_v62 = vld [vmem:[%s1732_s1 + $0x118] sm:$0xff]  }
  0x11   :  { %1163 = vmatpush3.bf16.msra.mxu1 %v1298_v15  ;;  %1142 = vmatprep.subr.bf16.mxu0 %v1299_v16  ;;  %v1331_v63 = vld [vmem:[%s1732_s1 + $0x198] sm:$0xff]   ;;  %v1332_v0 = vld [vmem:[%s1732_s1 + $0x160] sm:$0xff]   ;;  %v1336_v4 = vld [vmem:[%s1732_s1 + $0x168] sm:$0xff]  }
  0x12   :  { %1164 = vmatprep.subr.bf16.mxu1 %v1300_v17  ;;  %679 = vmatprep.mubr.bf16.mxu1 %v83_v51  ;;  %v1333_v1 = vld [vmem:[%s1732_s1 + $0x1e0] sm:$0xff]   ;;  %v1337_v5 = vld [vmem:[%s1732_s1 + $0x1e8] sm:$0xff]   ;;  %v1340_v8 = vld [vmem:[%s1732_s1 + $0x170] sm:$0xff]  }
  0x13   :  { %v1334_v2 = vld [vmem:[%s1732_s1 + $0x120] sm:$0xff]   ;;  %v1338_v6 = vld [vmem:[%s1732_s1 + $0x128] sm:$0xff]   ;;  %v1341_v9 = vld [vmem:[%s1732_s1 + $0x1f0] sm:$0xff]  }
  0x14   :  { %1143 = vmatpush3.bf16.msra.mxu0 %v1301_v18  ;;  %v1335_v3 = vld [vmem:[%s1732_s1 + $0x1a0] sm:$0xff]   ;;  %v1339_v7 = vld [vmem:[%s1732_s1 + $0x1a8] sm:$0xff]   ;;  %v1342_v11 = vld [vmem:[%s1732_s1 + $0x130] sm:$0xff]  }
  0x15   :  { %1165 = vmatpush3.bf16.msra.mxu1 %v1302_v19  ;;  %1144 = vmatprep.subr.bf16.mxu0 %v1303_v20  ;;  %v35_v10 = vld [vmem:[%s1731_s0 + $0x8] sm:$0xff]  ;;  %v1343_v12 = vld [vmem:[%s1732_s1 + $0x1b0] sm:$0xff]   ;;  %v1344_v15 = vld [vmem:[%s1732_s1 + $0x178] sm:$0xff]  }
  0x16   :  { %1166 = vmatprep.subr.bf16.mxu1 %v1304_v21  ;;  %v62_v13 = vrot.slane %v35_v10, %v1546_v41  ;;  %v55_v14 = vcombine.high %v35_v10, %v35_v10  ;;  %v1345_v16 = vld [vmem:[%s1732_s1 + $0x1f8] sm:$0xff]  }
  0x17   :  { %v1346_v19 = vld [vmem:[%s1732_s1 + $0x138] sm:$0xff]  }
  0x18   :  { %1145 = vmatpush3.bf16.msra.mxu0 %v1305_v22  ;;  %v70_v17 = vcombine.high %v62_v13, %v62_v13  ;;  %v69_v18 = vrot.slane %v55_v14, %v1546_v41  ;;  %v1347_v20 = vld [vmem:[%s1732_s1 + $0x1b8] sm:$0xff]  }
  0x19   :  { %1167 = vmatpush3.bf16.msra.mxu1 %v1306_v23  ;;  %1146 = vmatprep.subr.bf16.mxu0 %v1307_v24  ;;  %v84_v24 = vpack.c.bf16 %v62_v13, %v62_v13 }
  0x1a   :  { %1168 = vmatprep.subr.bf16.mxu1 %v1308_v25  ;;  %v85_v21 = vpack.c.bf16 %v70_v17, %v70_v17  ;;  %v71_v22 = vcombine.high %v69_v18, %v69_v18  ;;  %v86_v25 = vpack.c.bf16 %v69_v18, %v69_v18 }
  0x1c   :  { %1147 = vmatpush3.bf16.msra.mxu0 %v1309_v26  ;;  %v87_v23 = vpack.c.bf16 %v71_v22, %v71_v22 }
  0x1d   :  { %1169 = vmatpush3.bf16.msra.mxu1 %v1310_v27  ;;  %1148 = vmatprep.subr.bf16.mxu0 %v1311_v29 }
  0x1e   :  { %1170 = vmatprep.subr.bf16.mxu1 %v1312_v30 }
  0x20   :  { %1149 = vmatpush3.bf16.msra.mxu0 %v1313_v31 }
  0x21   :  { %1171 = vmatpush3.bf16.msra.mxu1 %v1314_v32  ;;  %1178 = vmatprep.subr.bf16.mxu0 %v1316_v35 }
  0x22   :  { %1200 = vmatprep.subr.bf16.mxu1 %v1317_v38 }
  0x23   :  { %640 = vmatmul.mubr.bf16.vlgmr.msra.gmra.mrb[0].mxu0 %v80_v47 }
  0x24   :  { %680 = vmatmul.mubr.bf16.vlgmr.msra.gmra.mrb[0].mxu1 %v82_v48  ;;  %1179 = vmatpush3.bf16.msra.mxu0 %v1318_v46 }
  0x25   :  { %1201 = vmatpush3.bf16.msra.mxu1 %v1319_v49  ;;  %1180 = vmatprep.subr.bf16.mxu0 %v1320_v52 }
  0x26   :  { %1202 = vmatprep.subr.bf16.mxu1 %v1321_v53  ;;  %719 = vmatprep.mubr.bf16.mxu0 %v85_v21 }
  0x27   :  { %759 = vmatprep.mubr.bf16.mxu1 %v87_v23 }
  0x28   :  { %1181 = vmatpush3.bf16.msra.mxu0 %v1322_v54 }
  0x29   :  { %1203 = vmatpush3.bf16.msra.mxu1 %v1323_v55  ;;  %1182 = vmatprep.subr.bf16.mxu0 %v1324_v56 }
  0x2a   :  { %1204 = vmatprep.subr.bf16.mxu1 %v1325_v57 }
  0x2c   :  { %1183 = vmatpush3.bf16.msra.mxu0 %v1326_v58 }
  0x2d   :  { %1205 = vmatpush3.bf16.msra.mxu1 %v1327_v59  ;;  %1184 = vmatprep.subr.bf16.mxu0 %v1328_v60 }
  0x2e   :  { %1206 = vmatprep.subr.bf16.mxu1 %v1329_v61 }
  0x30   :  { %1185 = vmatpush3.bf16.msra.mxu0 %v1330_v62 }
  0x31   :  { %1207 = vmatpush3.bf16.msra.mxu1 %v1331_v63  ;;  %1186 = vmatprep.subr.bf16.mxu0 %v1332_v0 }
  0x32   :  { %1208 = vmatprep.subr.bf16.mxu1 %v1333_v1 }
  0x34   :  { %1187 = vmatpush3.bf16.msra.mxu0 %v1334_v2 }
  0x35   :  { %1209 = vmatpush3.bf16.msra.mxu1 %v1335_v3  ;;  %1188 = vmatprep.subr.bf16.mxu0 %v1336_v4 }
  0x36   :  { %1210 = vmatprep.subr.bf16.mxu1 %v1337_v5 }
  0x38   :  { %1189 = vmatpush3.bf16.msra.mxu0 %v1338_v6 }
  0x39   :  { %1211 = vmatpush3.bf16.msra.mxu1 %v1339_v7  ;;  %1190 = vmatprep.subr.bf16.mxu0 %v1340_v8 }
  0x3a   :  { %1212 = vmatprep.subr.bf16.mxu1 %v1341_v9 }
  0x3c   :  { %1191 = vmatpush3.bf16.msra.mxu0 %v1342_v11 }
  0x3d   :  { %1213 = vmatpush3.bf16.msra.mxu1 %v1343_v12  ;;  %1192 = vmatprep.subr.bf16.mxu0 %v1344_v15 }
  0x3e   :  { %1214 = vmatprep.subr.bf16.mxu1 %v1345_v16 }
  0x3f   :  { %14 = vsyncpa [#allocation3], 0  ;;  %v1349_v26 = vld [vmem:[%s1734_s3] sm:$0xff]   ;;  %v1388_v27 = vmov 0.0   ;;  %v1350_v28 = vld [vmem:[%s1734_s3 + $0x8] sm:$0xff]   ;;  %vm1389_vm0 = vmmov 0  }
  0x40   :  { %1193 = vmatpush3.bf16.msra.mxu0 %v1346_v19  ;;  %v1351_v29 = vld [vmem:[%s1736_s5] sm:$0xff]   ;;  %v1352_v30 = vld [vmem:[%s1736_s5 + $0x8] sm:$0xff]   ;;  %v1353_v31 = vld [vmem:[%s1736_s5 + $0x10] sm:$0xff]   ;;  %vm792_vm1 = vcmask 261120   ;;  %vm990_vm2 = vcmask 523264   ;;  %s1390_s21 = smov [#allocation2]  }
  0x41   :  { %1215 = vmatpush3.bf16.msra.mxu1 %v1347_v20  ;;  %1239 = vmatprep.subr.bf16.mxu0 %v1388_v27  ;;  %v1354_v32 = vld [vmem:[%s1736_s5 + $0x18] sm:$0xff]   ;;  %v1355_v33 = vld [vmem:[%s1736_s5 + $0x20] sm:$0xff]   ;;  %v1356_v34 = vld [vmem:[%s1736_s5 + $0x28] sm:$0xff]   ;;  %vm1034_vm3 = vcmask 254976  }
  0x42   :  { %1247 = vmatprep.subr.bf16.mxu1 %v1388_v27  ;;  %v1050_v37 = vld [vmem:[%s1733_s2] ss:$0 sm:$0xff]  ;;  %v1357_v62 = vld [vmem:[%s1736_s5 + $0x30] sm:$0xff]   ;;  %v1358_v63 = vld [vmem:[%s1736_s5 + $0x38] sm:$0xff]  }
  0x43   :  { %720 = vmatmul.mubr.bf16.vlgmr.msra.gmra.mrb[4].mxu0 %v84_v24  ;;  %v1359_v0 = vld [vmem:[%s1738_s7] sm:$0xff]   ;;  %v1360_v1 = vld [vmem:[%s1738_s7 + $0x8] sm:$0xff]   ;;  %v1361_v10 = vld [vmem:[%s1738_s7 + $0x10] sm:$0xff]  }
  0x44   :  { %760 = vmatmul.mubr.bf16.vlgmr.msra.gmra.mrb[4].mxu1 %v86_v25  ;;  %1240 = vmatpush3.bf16.msra.mxu0 %v1349_v26  ;;  %v1115_v2 = vld [vmem:[%s1735_s4] ss:$0 sm:$0xff]  ;;  %v1362_v11 = vld [vmem:[%s1738_s7 + $0x18] sm:$0xff]   ;;  %s1042_s7 = sshll.u32 %s1390_s21, 4  ;;  %s1043_s7 = int_to_ptr.vmem [resolvable:$true] %s1042_s7 }
  0x45   :  { %1241 = vmatprep.subr.bf16.mxu0 %v1388_v27  ;;  %1243 = vmatprep.mubr.msk.bf16.mxu0 %vm1389_vm0, %v1388_v27  ;;  %v1119_v12 = vld [vmem:[%s1737_s6] ss:$0 sm:$0xff]  ;;  %s1363_s6 = scalar_lea.vmem %s1043_s7, 32  ;;  %p1368_p1 = scmp.lt.s32.totalorder %s1043_s7, %s1043_s7 }
  0x46   :  { %1263 = vmatprep.mubr.msk.bf16.mxu1 %vm1389_vm0, %v1388_v27  ;;  %1248 = vmatpush3.bf16.msra.mxu1 %v1351_v29  ;;  %v1128_v20 = vld [vmem:[%s1739_s8] ss:$0 sm:$0xff]  ;;  %p1364_p0 = scmp.ne.s32.totalorder %s1043_s7, %s1363_s6  ;;  %p1369_p2 = scmp.lt.s32.totalorder %s1363_s6, %s1363_s6 }
  0x47   :  { %1249 = vmatprep.subr.bf16.mxu1 %v1388_v27 }
  0x48   :  { %1242 = vmatpush3.bf16.msra.mxu0 %v1350_v28  ;;  %p1370_p3 = por %p1369_p2, %p1368_p1 }
  0x49   :  { %1267 = vmatprep.subr.bf16.mxu0 %v1388_v27 }
  0x4a   :  { %1250 = vmatpush3.bf16.msra.mxu1 %v1352_v30  ;;  %p1371_p4 = pnand %p1370_p3, %p1364_p0 }
  0x4b   :  { %1251 = vmatprep.subr.bf16.mxu1 %v1388_v27 }
  0x4e   :  { %1252 = vmatpush3.bf16.msra.mxu1 %v1353_v31 }
  0x4f   :  { %1253 = vmatprep.subr.bf16.mxu1 %v1388_v27 }
  0x52   :  { %1254 = vmatpush3.bf16.msra.mxu1 %v1354_v32 }
  0x53   :  { %1255 = vmatprep.subr.bf16.mxu1 %v1388_v27 }
  0x56   :  { %1256 = vmatpush3.bf16.msra.mxu1 %v1355_v33 }
  0x57   :  { %1257 = vmatprep.subr.bf16.mxu1 %v1388_v27 }
  0x5a   :  { %1258 = vmatpush3.bf16.msra.mxu1 %v1356_v34 }
  0x5b   :  { %1259 = vmatprep.subr.bf16.mxu1 %v1388_v27 }
  0x5e   :  { %1260 = vmatpush3.bf16.msra.mxu1 %v1357_v62 }
  0x5f   :  { %1261 = vmatprep.subr.bf16.mxu1 %v1388_v27 }
  0x62   :  { %1262 = vmatpush3.bf16.msra.mxu1 %v1358_v63 }
  0xf6   :  { %v1150_v35 = vpop.f32.mrb[0].mxu0 }
  0xf7   :  { %v1172_v36 = vpop.f32.mrb[0].mxu1  ;;  %v1151_v38 = vpop.f32.mrb[1].mxu0 }
  0xf8   :  { %v1173_v39 = vpop.f32.mrb[1].mxu1  ;;  %v1152_v40 = vadd.f32 %v1151_v38, %v1150_v35  ;;  %v1153_v42 = vpop.f32.mrb[2].mxu0 }
  0xf9   :  { %v1174_v41 = vadd.f32 %v1173_v39, %v1172_v36  ;;  %v1175_v43 = vpop.f32.mrb[2].mxu1  ;;  %v1154_v44 = vpop.f32.mrb[3].mxu0 }
  0xfa   :  { %v1176_v45 = vpop.f32.mrb[3].mxu1  ;;  %v642_v46 = vadd.f32 %v1152_v40, %v1050_v37 }
  0xfc   :  { %v682_v47 = vadd.f32 %v1174_v41, %v642_v46 }
 0x116   :  { %v1194_v48 = vpop.f32.mrb[4].mxu0 }
 0x117   :  { %v1216_v49 = vpop.f32.mrb[4].mxu1  ;;  %v1195_v50 = vpop.f32.mrb[5].mxu0 }
 0x118   :  { %v1217_v51 = vpop.f32.mrb[5].mxu1  ;;  %v1196_v52 = vadd.f32 %v1195_v50, %v1194_v48  ;;  %v1197_v54 = vpop.f32.mrb[6].mxu0 }
 0x119   :  { %v1218_v53 = vadd.f32 %v1217_v51, %v1216_v49  ;;  %v1219_v55 = vpop.f32.mrb[6].mxu1  ;;  %v1198_v56 = vpop.f32.mrb[7].mxu0 }
 0x11a   :  { %v1220_v57 = vpop.f32.mrb[7].mxu1  ;;  %v722_v58 = vadd.f32 %v1196_v52, %v682_v47 }
 0x11c   :  { %v762_v59 = vadd.f32 %v1218_v53, %v722_v58 }
 0x11e   :  { %v767_v60 = vmax.f32 %v762_v59, 0.0 }
 0x120   :  { %v768_v61 = vpack.c.bf16 %v767_v60, %v767_v60 }
 0x122   :  { %1244 = vmatmul.mubr.msk.bf16.vlgmr.msra.gmra.mrb[8].mxu0 %vm792_vm1, %v768_v61 }
 0x123   :  { %1275 = vmatprep.mubr.msk.bf16.mxu0 %vm1389_vm0, %v1388_v27  ;;  %1268 = vmatpush3.bf16.msra.mxu0 %v1359_v0 }
 0x124   :  { %1269 = vmatprep.subr.bf16.mxu0 %v1388_v27 }
 0x127   :  { %1270 = vmatpush3.bf16.msra.mxu0 %v1360_v1 }
 0x128   :  { %1271 = vmatprep.subr.bf16.mxu0 %v1388_v27 }
 0x12b   :  { %1272 = vmatpush3.bf16.msra.mxu0 %v1361_v10 }
 0x12c   :  { %1273 = vmatprep.subr.bf16.mxu0 %v1388_v27 }
 0x12f   :  { %1274 = vmatpush3.bf16.msra.mxu0 %v1362_v11 }
 0x1f5   :  { %v830_v3 = vpop.f32.mrb[8].mxu0 }
 0x1f6   :  { %v831_v4 = vadd.f32 %v1115_v2, %v830_v3  ;;  %v1245_v5 = vpop.f32.mrb[9].mxu0 }
 0x1f7   :  { %v833_v6 = vpop.f32.mrb[10].mxu0 }
 0x1f8   :  { %v836_v7 = vmax.f32 %v831_v4, 0.0  ;;  %v1246_v8 = vpop.f32.mrb[11].mxu0 }
 0x1fa   :  { %v837_v9 = vpack.c.bf16 %v836_v7, %v836_v7 }
 0x1fc   :  { %1264 = vmatmul.mubr.bf16.vlgmr.msra.gmra.mrb[8].mxu1 %v837_v9 }
 0x2cf   :  { %v943_v13 = vpop.f32.mrb[8].mxu1 }
 0x2d0   :  { %v944_v14 = vadd.f32 %v1119_v12, %v943_v13  ;;  %v1265_v15 = vpop.f32.mrb[9].mxu1 }
 0x2d1   :  { %v946_v16 = vpop.f32.mrb[10].mxu1 }
 0x2d2   :  { %v949_v17 = vmax.f32 %v944_v14, 0.0  ;;  %v1266_v18 = vpop.f32.mrb[11].mxu1 }
 0x2d4   :  { %v950_v19 = vpack.c.bf16 %v949_v17, %v949_v17 }
 0x2d6   :  { %1276 = vmatmul.mubr.msk.bf16.vlgmr.msra.gmra.mrb[12].mxu0 %vm990_vm2, %v950_v19 }
 0x3a9   :  { %v1028_v21 = vpop.f32.mrb[12].mxu0 }
 0x3aa   :  { %v1029_v22 = vadd.f32 %v1128_v20, %v1028_v21  ;;  %v1277_v23 = vpop.f32.mrb[13].mxu0 }
 0x3ab   :  { %v1031_v24 = vpop.f32.mrb[14].mxu0 }
 0x3ac   :  { %v1278_v25 = vpop.f32.mrb[15].mxu0  ;;  %1035 = vst.msk [vmem:[#allocation2] sm:$0x3] %vm1034_vm3, %v1029_v22 }
 0x3ad   :  { %1374 = shalt.err (!%p1371_p4)
}
 0x3ae   :  { %s1375_s8 = scalar_lea.hbm %s1740_s9, 32 }
 0x3af   :  { %p1376_p5 = scmp.ne.s32.totalorder %s1740_s9, %s1375_s8  ;;  %p1379_p6 = scmp.lt.u32.totalorder %s1375_s8, %s1740_s9 }
 0x3b1   :  { %p1381_p7 = pnand %p1379_p6, %p1376_p5 }
 0x3b3   :  { %1384 = shalt.err (!%p1381_p7)
}
 0x3b4   :  { %1045 = dma.vmem_to_hbm [thread:$0]  %s1043_s7, 32, %s1740_s9, [#allocation3]  }
 0x3b5   :  { %1385 = dma.done.wait [#allocation3], 32  }
 0x3b6   :  { %1386 = vsyncadd [#allocation3], 4294967264 }
 0x3b7   :  { %1049 = vsyncpa [#allocation3], 1 }

</bundles_post_ra>
